<compile_context>
chip_gen: v6e
topology: v6e:2x2x1
jax: 0.10.0
libtpu: 0.0.40
codegen_flags: <defaults>
</compile_context>

<pallas_src>
import math
import functools

import numpy as np
import jax
import jax.numpy as jnp
from jax import lax
from jax.experimental import pallas as pl
from jax.experimental.pallas import tpu as pltpu


# ---------------------------------------------------------------------------
# Parameter init: gaussian orthogonal random matrix (deterministic, scaling=0)
# ---------------------------------------------------------------------------
def gaussian_orthogonal_random_matrix(key, nb_rows, nb_columns, scaling=0):
    nb_full_blocks = nb_rows // nb_columns
    keys = jax.random.split(key, nb_full_blocks + 2)
    blocks = []
    for i in range(nb_full_blocks):
        g = jax.random.normal(keys[i], (nb_columns, nb_columns), dtype=jnp.float32)
        qmat, _ = jnp.linalg.qr(g)
        blocks.append(qmat.T)
    remaining = nb_rows - nb_full_blocks * nb_columns
    if remaining > 0:
        g = jax.random.normal(keys[nb_full_blocks], (nb_columns, nb_columns),
                              dtype=jnp.float32)
        qmat, _ = jnp.linalg.qr(g)
        blocks.append(qmat.T[:remaining])
    final = jnp.concatenate(blocks, axis=0)
    if scaling == 0:
        multiplier = jnp.linalg.norm(
            jax.random.normal(keys[-1], (nb_rows, nb_columns), dtype=jnp.float32),
            axis=1)
    elif scaling == 1:
        multiplier = jnp.sqrt(float(nb_columns)) * jnp.ones((nb_rows,), jnp.float32)
    else:
        raise ValueError("invalid scaling")
    return multiplier[:, None] * final


def _pick_tile(n, target, align=8):
    """Largest divisor of `n` that is <= target and a multiple of `align`.
    Falls back to `n` (the full dimension) when no such divisor exists."""
    if n <= target:
        return n
    for t in range(min(target, n), 0, -1):
        if n % t == 0 and t % align == 0:
            return t
    return n


# ---------------------------------------------------------------------------
# Pass 1: per-block maxima of k_dash = k @ proj_scaled^T
#         (fully parallel; global max taken outside the pallas_call)
# ---------------------------------------------------------------------------
def _kmax_kernel(proj_ref, k_ref, out_ref, *, m_real):
    k_dash = lax.dot_general(k_ref[...], proj_ref[...],
                             (((1,), (1,)), ((), ())),
                             preferred_element_type=jnp.float32)   # (TR, M_pad)
    m_pad = k_dash.shape[-1]
    if m_real < m_pad:
        # zero-padded projection rows must not influence the global max
        col = lax.broadcasted_iota(jnp.int32, k_dash.shape, 1)
        k_dash = jnp.where(col < m_real, k_dash, -jnp.inf)
    # splat the scalar block max into the (1, 1, 1) output block
    out_ref[...] = jnp.zeros_like(out_ref) + jnp.max(k_dash)


# ---------------------------------------------------------------------------
# Pass 2a: k-stage.  For each head block accumulate over sequence tiles:
#            ctx  += k_feat^T @ v          (G, M_pad, D)
#            ksum += sum_n k_feat          (G, 1, M_pad)   (lane-dense row)
# ---------------------------------------------------------------------------
def _kstage_kernel(kmax_ref, proj_ref, k_ref, v_ref, ctx_ref, ksum_ref, *,
                   normalizer, ratio, eps, m_real, compute_dtype):
    @pl.when(pl.program_id(1) == 0)
    def _init():
        ctx_ref[...] = jnp.zeros_like(ctx_ref)
        ksum_ref[...] = jnp.zeros_like(ksum_ref)

    G, TN, D = k_ref.shape
    M = proj_ref.shape[0]
    k_gmax = kmax_ref[0, 0]                                   # scalar from SMEM

    k = k_ref[...]                                            # (G, TN, D)
    # projection matmul on the MXU (normalizer already folded into proj)
    k_dash = lax.dot_general(k.reshape(G * TN, D), proj_ref[...],
                             (((1,), (1,)), ((), ())),
                             preferred_element_type=jnp.float32)
    k_dash = k_dash.reshape(G, TN, M)

    k_f32 = k.astype(jnp.float32)
    diag_k = jnp.sum(k_f32 * k_f32, axis=-1, keepdims=True) * (
        0.5 * normalizer * normalizer)
    k_feat = ratio * (jnp.exp(k_dash - diag_k - k_gmax) + eps)        # f32
    if m_real < M:
        # padded feature columns must contribute nothing (mask AFTER exp+eps)
        col = lax.broadcasted_iota(jnp.int32, k_feat.shape, 2)
        k_feat = jnp.where(col < m_real, k_feat, 0.0)

    # denominator contributions: sublane reduction, lane-dense (1, M_pad) row
    ksum_ref[...] += jnp.sum(k_feat, axis=1, keepdims=True)

    # TODO(synk): contraction over sublane axis n may insert an XLU transpose
    # of k_feat; a transposed (m-major) layout would make this MXU-native.
    ctx_ref[...] += jnp.einsum('gnm,gnd->gmd',
                               k_feat.astype(compute_dtype), v_ref[...],
                               preferred_element_type=jnp.float32)


# ---------------------------------------------------------------------------
# Pass 2b: q-stage.  q feature map + output matmul + f32 normalization.
# ---------------------------------------------------------------------------
def _qstage_kernel(proj_ref, q_ref, ctx_ref, ksum_ref, out_ref, *,
                   normalizer, ratio, eps, m_real, compute_dtype, approx_recip):
    G, TN, D = q_ref.shape
    M = proj_ref.shape[0]

    q = q_ref[...]
    q_dash = lax.dot_general(q.reshape(G * TN, D), proj_ref[...],
                             (((1,), (1,)), ((), ())),
                             preferred_element_type=jnp.float32)
    q_dash = q_dash.reshape(G, TN, M)

    if m_real < M:
        col = lax.broadcasted_iota(jnp.int32, q_dash.shape, 2)
        row_max = jnp.max(jnp.where(col < m_real, q_dash, -jnp.inf),
                          axis=-1, keepdims=True)
    else:
        row_max = jnp.max(q_dash, axis=-1, keepdims=True)

    q_f32 = q.astype(jnp.float32)
    diag_q = jnp.sum(q_f32 * q_f32, axis=-1, keepdims=True) * (
        0.5 * normalizer * normalizer)
    q_feat = ratio * (jnp.exp(q_dash - diag_q - row_max) + eps)       # f32
    # padded feature columns need no masking here: ksum / ctx are exactly
    # zero in those positions, so their contribution vanishes.

    # denominator kept in f32 (review concern): VPU multiply + lane reduce
    denom = jnp.sum(q_feat * ksum_ref[...], axis=-1, keepdims=True)   # (G,TN,1)

    num = jnp.einsum('gnm,gmd->gnd',
                     q_feat.astype(compute_dtype),
                     ctx_ref[...].astype(compute_dtype),
                     preferred_element_type=jnp.float32)              # (G,TN,D)

    if approx_recip:
        d_inv = pl.reciprocal(denom, approx=True)
    else:
        d_inv = 1.0 / denom
    out_ref[...] = (num * d_inv).astype(out_ref.dtype)


# ---------------------------------------------------------------------------
# Wrapper
# ---------------------------------------------------------------------------
def fast_attention(q, k, v, projection_matrix, *,
                   compute_dtype=jnp.bfloat16,
                   out_dtype=None,
                   seq_tile=1024,
                   kmax_row_tile=2048,
                   approx_recip=False,
                   vmem_limit_bytes=32 * 1024 * 1024):
    """Non-causal Performer FastAttention forward (softmax_kernel path)."""
    B, H, N, D = q.shape
    M_real = projection_matrix.shape[0]
    BH = B * H
    normalizer = float(D) ** -0.25
    ratio = float(M_real) ** -0.5
    eps = 1e-4

    use_bf16 = jnp.dtype(compute_dtype) == jnp.dtype(jnp.bfloat16)
    compute_dtype = jnp.bfloat16 if use_bf16 else jnp.float32
    in_dtype = compute_dtype
    out_dtype = jnp.dtype(out_dtype) if out_dtype is not None else q.dtype

    # Pad the feature (lane) dim of the projection to a multiple of 128 so the
    # projection matmuls use full lanes; fold the normalizer into it once.
    M_pad = ((M_real + 127) // 128) * 128
    proj_scaled = projection_matrix.astype(jnp.float32) * normalizer
    if M_pad != M_real:
        proj_scaled = jnp.pad(proj_scaled, ((0, M_pad - M_real), (0, 0)))
    proj_in = proj_scaled.astype(in_dtype)

    qf = q.reshape(BH, N, D).astype(in_dtype)
    kf = k.reshape(BH, N, D).astype(in_dtype)
    vf = v.reshape(BH, N, D).astype(in_dtype)

    # ---- tiling: sequence tiles (large N) / head batching (small N) --------
    # NOTE: _pick_tile falls back to the full dimension when no aligned
    # divisor exists (legal, but large prime-ish N becomes one big tile).
    if N > seq_tile:
        G, TN = 1, _pick_tile(N, seq_tile, align=8)
    elif N % 8 == 0:
        TN = N
        target = max(1, (2 * seq_tile) // N)
        if BH >= 2:
            # keep >= 2 head blocks so both v7x TensorCores get work
            target = min(target, BH // 2)
        G = _pick_tile(BH, max(1, target), align=1)
    else:
        G, TN = 1, N
    n_hb, n_nt = BH // G, N // TN

    # ---- pass 1: global max of k_dash (parallel per-block maxima) ----------
    R = BH * N
    TR = _pick_tile(R, kmax_row_tile, align=8)
    n_rb = R // TR
    kmax_blocks = pl.pallas_call(
        functools.partial(_kmax_kernel, m_real=M_real),
        out_shape=jax.ShapeDtypeStruct((n_rb, 1, 1), jnp.float32),
        grid=(n_rb,),
        in_specs=[
            pl.BlockSpec((M_pad, D), lambda i: (0, 0)),
            pl.BlockSpec((TR, D), lambda i: (i, 0)),
        ],
        out_specs=pl.BlockSpec((1, 1, 1), lambda i: (i, 0, 0)),
        compiler_params=pltpu.CompilerParams(
            dimension_semantics=("parallel",),
            vmem_limit_bytes=vmem_limit_bytes),
    )(proj_in, kf.reshape(R, D))
    k_gmax = jnp.max(kmax_blocks).reshape(1, 1).astype(jnp.float32)

    # ---- pass 2a: k-stage (context + k_cumsum accumulation over seq tiles) -
    ctx, ksum = pl.pallas_call(
        functools.partial(_kstage_kernel, normalizer=normalizer, ratio=ratio,
                          eps=eps, m_real=M_real, compute_dtype=compute_dtype),
        out_shape=(jax.ShapeDtypeStruct((BH, M_pad, D), jnp.float32),
                   jax.ShapeDtypeStruct((BH, 1, M_pad), jnp.float32)),
        grid=(n_hb, n_nt),
        in_specs=[
            pl.BlockSpec(memory_space=pltpu.MemorySpace.SMEM),     # global k max
            pl.BlockSpec((M_pad, D), lambda b, n: (0, 0)),         # projection
            pl.BlockSpec((G, TN, D), lambda b, n: (b, n, 0)),      # k tile
            pl.BlockSpec((G, TN, D), lambda b, n: (b, n, 0)),      # v tile
        ],
        out_specs=(pl.BlockSpec((G, M_pad, D), lambda b, n: (b, 0, 0)),
                   pl.BlockSpec((G, 1, M_pad), lambda b, n: (b, 0, 0))),
        compiler_params=pltpu.CompilerParams(
            dimension_semantics=("parallel", "arbitrary"),
            vmem_limit_bytes=vmem_limit_bytes),
    )(k_gmax, proj_in, kf, vf)

    # ---- pass 2b: q-stage (features + output matmul + normalization) -------
    out = pl.pallas_call(
        functools.partial(_qstage_kernel, normalizer=normalizer, ratio=ratio,
                          eps=eps, m_real=M_real, compute_dtype=compute_dtype,
                          approx_recip=approx_recip),
        out_shape=jax.ShapeDtypeStruct((BH, N, D), out_dtype),
        grid=(n_hb, n_nt),
        in_specs=[
            pl.BlockSpec((M_pad, D), lambda b, n: (0, 0)),         # projection
            pl.BlockSpec((G, TN, D), lambda b, n: (b, n, 0)),      # q tile
            pl.BlockSpec((G, M_pad, D), lambda b, n: (b, 0, 0)),   # context
            pl.BlockSpec((G, 1, M_pad), lambda b, n: (b, 0, 0)),   # k_cumsum
        ],
        out_specs=pl.BlockSpec((G, TN, D), lambda b, n: (b, n, 0)),
        compiler_params=pltpu.CompilerParams(
            dimension_semantics=("parallel", "parallel"),
            vmem_limit_bytes=vmem_limit_bytes),
    )(proj_in, qf, ctx, ksum)

    return out.reshape(B, H, N, D)


# ---------------------------------------------------------------------------
# Pure-JAX reference (mirrors the PyTorch softmax_kernel + linear_attention).
# `matmul_dtype` lets the reference mimic the kernel's bf16 matmul operands
# (normalizer folded into the projection, f32 accumulation).
# ---------------------------------------------------------------------------
def fast_attention_ref(q, k, v, proj, matmul_dtype=jnp.float32):
    D = q.shape[-1]
    M = proj.shape[0]
    norm = float(D) ** -0.25
    ratio = float(M) ** -0.5
    eps = 1e-4
    q = q.astype(matmul_dtype).astype(jnp.float32)
    k = k.astype(matmul_dtype).astype(jnp.float32)
    v = v.astype(matmul_dtype).astype(jnp.float32)

    if jnp.dtype(matmul_dtype) == jnp.dtype(jnp.float32):
        # faithful to the PyTorch ordering: (norm * x) @ proj^T
        def proj_mm(x):
            return jnp.einsum('bhnd,md->bhnm', x * norm,
                              proj.astype(jnp.float32),
                              preferred_element_type=jnp.float32)
    else:
        # mimic the kernel's bf16 operand rounding: x @ (norm * proj)^T
        proj_c = (proj.astype(jnp.float32) * norm).astype(matmul_dtype)
        def proj_mm(x):
            return jnp.einsum('bhnd,md->bhnm', x.astype(matmul_dtype), proj_c,
                              preferred_element_type=jnp.float32)

    q_dash = proj_mm(q)
    k_dash = proj_mm(k)
    diag_q = jnp.sum(q * q, -1, keepdims=True) / 2.0 * norm ** 2
    diag_k = jnp.sum(k * k, -1, keepdims=True) / 2.0 * norm ** 2
    qf = ratio * (jnp.exp(q_dash - diag_q - jnp.max(q_dash, -1, keepdims=True)) + eps)
    kf = ratio * (jnp.exp(k_dash - diag_k - jnp.max(k_dash)) + eps)
    k_cumsum = kf.sum(-2)
    d_inv = 1.0 / jnp.einsum('bhnm,bhm->bhn', qf, k_cumsum)
    context = jnp.einsum('bhnm,bhnd->bhmd', kf, v)
    return jnp.einsum('bhmd,bhnm,bhn->bhnd', context, qf, d_inv)


if __name__ == "__main__":
    key = jax.random.PRNGKey(0)
    kq, kk, kv, kp = jax.random.split(key, 4)

    B, H, N, dim_heads = 2, 2, 8, 16
    nb_features = int(dim_heads * math.log(dim_heads))   # default() -> 44

    q = jax.random.normal(kq, (B, H, N, dim_heads), dtype=jnp.float32)
    k = jax.random.normal(kk, (B, H, N, dim_heads), dtype=jnp.float32)
    v = jax.random.normal(kv, (B, H, N, dim_heads), dtype=jnp.float32)
    projection_matrix = gaussian_orthogonal_random_matrix(
        kp, nb_rows=nb_features, nb_columns=dim_heads, scaling=0)

    # Exact-precision path: must match the f32 reference tightly.
    out_f32 = jax.block_until_ready(
        fast_attention(q, k, v, projection_matrix, compute_dtype=jnp.float32))
    ref_f32 = jax.block_until_ready(
        fast_attention_ref(q, k, v, projection_matrix))
    np.testing.assert_allclose(np.asarray(out_f32), np.asarray(ref_f32),
                               rtol=2e-5, atol=2e-5)

    # Performance path (bf16 MXU operands, f32 accumulation): loose check
    # against a reference that also uses bf16 matmul operands.
    out_bf16 = jax.block_until_ready(
        fast_attention(q, k, v, projection_matrix))
    ref_bf16 = jax.block_until_ready(
        fast_attention_ref(q, k, v, projection_matrix,
                           matmul_dtype=jnp.bfloat16))
    np.testing.assert_allclose(np.asarray(out_bf16), np.asarray(ref_bf16),
                               rtol=3e-2, atol=3e-2)

    print("KERNEL_OK")
</pallas_src>

<mosaic_0001>
module attributes {stable_mosaic.version = 11 : i64} {
  func.func @_kmax_kernel(%arg0: i32, %arg1: memref<128x16xf32, #tpu.memory_space<vmem>>, %arg2: memref<32x16xf32, #tpu.memory_space<vmem>>, %arg3: memref<1x1x1xf32, #tpu.memory_space<vmem>>) attributes {dimension_semantics = [#tpu.dimension_semantics<parallel>], iteration_bounds = array<i64: 1>, scalar_prefetch = 0 : i64, scratch_operands = 0 : i64, tpu.core_type = #tpu.core_type<tc>, window_params = [{pipeline_mode = #tpu.pipeline_mode<synchronous>, transform_indices = @transform_0, window_bounds = array<i64: 128, 16>}, {transform_indices = @transform_1, window_bounds = array<i64: 32, 16>}, {transform_indices = @transform_2, window_bounds = array<i64: 1, 1, 1>}]} {
    %c0 = arith.constant 0 : index
    %c0_0 = arith.constant 0 : index
    %0 = vector.load %arg2[%c0, %c0_0] : memref<32x16xf32, #tpu.memory_space<vmem>>, vector<32x16xf32>
    %c0_1 = arith.constant 0 : index
    %c0_2 = arith.constant 0 : index
    %1 = vector.load %arg1[%c0_1, %c0_2] : memref<128x16xf32, #tpu.memory_space<vmem>>, vector<128x16xf32>
    %cst = arith.constant dense<0.000000e+00> : vector<32x128xf32>
    %2 = tpu.matmul %0, %1, %cst {dimension_numbers = #tpu.dot_dimension_numbers<[1], [1], [0], [0], [0, 0, 1, 0], [], []>} : vector<32x16xf32>, vector<128x16xf32>, vector<32x128xf32> -> vector<32x128xf32>
    %3 = tpu.iota {dimensions = array<i32: 1>} : vector<32x128xi32>
    %c44_i32 = arith.constant 44 : i32
    %4 = vector.broadcast %c44_i32 : i32 to vector<32x128xi32>
    %5 = arith.cmpi slt, %3, %4 : vector<32x128xi32>
    %cst_3 = arith.constant 0xFF800000 : f32
    %6 = vector.broadcast %cst_3 : f32 to vector<32x128xf32>
    %7 = arith.select %5, %2, %6 : vector<32x128xi1>, vector<32x128xf32>
    %cst_4 = arith.constant 0.000000e+00 : f32
    %8 = vector.broadcast %cst_4 : f32 to vector<1x1x1xf32>
    %9 = vector.shape_cast %7 : vector<32x128xf32> to vector<1x32x128xf32>
    %cst_5 = arith.constant dense<0xFF800000> : vector<1xf32>
    %10 = vector.multi_reduction <maximumf>, %9, %cst_5 [1, 2] : vector<1x32x128xf32> to vector<1xf32>
    %11 = vector.shape_cast %10 : vector<1xf32> to vector<1x1x1xf32>
    %12 = vector.extract %11[0, 0, 0] : f32 from vector<1x1x1xf32>
    %13 = vector.broadcast %12 : f32 to vector<1x1x1xf32>
    %14 = arith.addf %8, %13 : vector<1x1x1xf32>
    %c0_6 = arith.constant 0 : index
    %c0_7 = arith.constant 0 : index
    %c0_8 = arith.constant 0 : index
    %15 = vector.load %arg3[%c0_6, %c0_7, %c0_8] : memref<1x1x1xf32, #tpu.memory_space<vmem>>, vector<1x1x1xf32>
    tpu.vector_store %arg3[%c0_6, %c0_7, %c0_8], %14 {strides = array<i32>} : memref<1x1x1xf32, #tpu.memory_space<vmem>>, vector<1x1x1xf32>,
    return
  }
  func.func @transform_0(%arg0: i32) -> (i32, i32) {
    %c0_i32 = arith.constant 0 : i32
    %c0_i32_0 = arith.constant 0 : i32
    %c0_i32_1 = arith.constant 0 : i32
    return %c0_i32, %c0_i32_0 : i32, i32
  }
  func.func @transform_1(%arg0: i32) -> (i32, i32) {
    %c0_i32 = arith.constant 0 : i32
    %c0_i32_0 = arith.constant 0 : i32
    return %arg0, %c0_i32 : i32, i32
  }
  func.func @transform_2(%arg0: i32) -> (i32, i32, i32) {
    %c0_i32 = arith.constant 0 : i32
    %c0_i32_0 = arith.constant 0 : i32
    %c0_i32_1 = arith.constant 0 : i32
    return %arg0, %c0_i32, %c0_i32_0 : i32, i32, i32
  }
}

</mosaic_0001>

<bundles_post_ra>
// kernel: tpu_custom_call.1
= control target key start
LH: loop header
LB: loop body
LE: loop exit
PB: predicated region body
PF: predicated region fallthrough
CT: control target
= control target key end

     0   :  { %vm32_vm0 = vcmask 130048   ;;  %s497_s0 = inlined_call_operand.vmem [shape: f32[128,16], index: 0, kind: input, shape index: {}]   ;;  %s498_s1 = inlined_call_operand.vmem [shape: f32[32,16], index: 1, kind: input, shape index: {}]   ;;  %s499_s2 = inlined_call_operand.hbm [shape: f32[1,1,1], index: 2, kind: output, shape index: {}]  }
   0x1   :  { %v31_v0 = vld [vmem:[%s497_s0 + $0x78] sm:$0xff]  ;;  %v30_v1 = vld [vmem:[%s497_s0 + $0x70] sm:$0xff]  ;;  %v29_v2 = vld [vmem:[%s497_s0 + $0x68] sm:$0xff] }
   0x2   :  { %255 = vmatprep.subr.msk.mxu0 %vm32_vm0, %v31_v0  ;;  %293 = vmatprep.subr.msk.mxu1 %vm32_vm0, %v31_v0  ;;  %v12_v3 = vld [vmem:[%s498_s1] sm:$0xff]  ;;  %v14_v4 = vld [vmem:[%s498_s1 + $0x10] sm:$0xff] }
   0x3   :  { %256 = vmatpush3.xpose.msk.msra.mxu0 %vm32_vm0, %v31_v0  ;;  %309 = vmatpush3.xpose.msk.msra.mxu1 %vm32_vm0, %v31_v0 }
   0x4   :  { %257 = vmatprep.subr.msk.mxu0 %vm32_vm0, %v30_v1  ;;  %294 = vmatprep.subr.msk.mxu1 %vm32_vm0, %v30_v1 }
   0x7   :  { %258 = vmatpush3.xpose.msk.msra.mxu0 %vm32_vm0, %v30_v1  ;;  %310 = vmatpush3.xpose.msk.msra.mxu1 %vm32_vm0, %v30_v1 }
   0x8   :  { %7 = vsyncpa [#allocation3], 0  ;;  %259 = vmatprep.subr.msk.mxu0 %vm32_vm0, %v29_v2  ;;  %295 = vmatprep.subr.msk.mxu1 %vm32_vm0, %v29_v2  ;;  %v28_v5 = vld [vmem:[%s497_s0 + $0x60] sm:$0xff]  ;;  %v27_v6 = vld [vmem:[%s497_s0 + $0x58] sm:$0xff]  ;;  %v178_v20 = vlaneseq  ;;  %vm199_vm2 = vcmask 0  }
   0x9   :  { %287 = vmatprep.mubr.msk.f32.mxu0 %vm32_vm0, %v12_v3  ;;  %290 = vmatprep.mubr.msk.f32.mxu1 %vm32_vm0, %v14_v4  ;;  %v26_v7 = vld [vmem:[%s497_s0 + $0x50] sm:$0xff]  ;;  %v25_v8 = vld [vmem:[%s497_s0 + $0x48] sm:$0xff]  ;;  %v24_v9 = vld [vmem:[%s497_s0 + $0x40] sm:$0xff] }
   0xa   :  { %v23_v10 = vld [vmem:[%s497_s0 + $0x38] sm:$0xff]  ;;  %v22_v11 = vld [vmem:[%s497_s0 + $0x30] sm:$0xff]  ;;  %v21_v12 = vld [vmem:[%s497_s0 + $0x28] sm:$0xff]  ;;  %v179_v21 = vand.u32 127, %v178_v20 }
   0xb   :  { %260 = vmatpush3.xpose.msk.msra.mxu0 %vm32_vm0, %v29_v2  ;;  %311 = vmatpush3.xpose.msk.msra.mxu1 %vm32_vm0, %v29_v2  ;;  %v20_v13 = vld [vmem:[%s497_s0 + $0x20] sm:$0xff]  ;;  %v19_v14 = vld [vmem:[%s497_s0 + $0x18] sm:$0xff]  ;;  %v18_v15 = vld [vmem:[%s497_s0 + $0x10] sm:$0xff] }
   0xc   :  { %261 = vmatprep.subr.msk.mxu0 %vm32_vm0, %v28_v5  ;;  %296 = vmatprep.subr.msk.mxu1 %vm32_vm0, %v28_v5  ;;  %v17_v16 = vld [vmem:[%s497_s0 + $0x8] sm:$0xff]  ;;  %v16_v17 = vld [vmem:[%s497_s0] sm:$0xff]  ;;  %v15_v19 = vld [vmem:[%s498_s1 + $0x18] sm:$0xff]  ;;  %vm180_vm1 = vcmp.lt.s32.totalorder %v179_v21, 44  ;;  %s350_s0 = smov [#allocation2]  }
   0xd   :  { %v13_v18 = vld [vmem:[%s498_s1 + $0x8] sm:$0xff]  ;;  %s207_s1 = sshll.u32 %s350_s0, 4  ;;  %s208_s1 = int_to_ptr.vmem [resolvable:$true] %s207_s1 }
   0xe   :  { %s328_s22 = scalar_lea.vmem %s208_s1, 16  ;;  %s332_s23 = scalar_lea.vmem %s208_s1, 32 }
   0xf   :  { %262 = vmatpush3.xpose.msk.msra.mxu0 %vm32_vm0, %v28_v5  ;;  %312 = vmatpush3.xpose.msk.msra.mxu1 %vm32_vm0, %v28_v5  ;;  %p329_p0 = scmp.ne.s32.totalorder %s208_s1, %s328_s22  ;;  %p333_p1 = scmp.lt.s32.totalorder %s208_s1, %s208_s1 }
  0x10   :  { %263 = vmatprep.subr.msk.mxu0 %vm32_vm0, %v27_v6  ;;  %297 = vmatprep.subr.msk.mxu1 %vm32_vm0, %v27_v6  ;;  %p334_p2 = scmp.lt.s32.totalorder %s332_s23, %s328_s22 }
  0x12   :  { %p335_p3 = por %p334_p2, %p333_p1 }
  0x13   :  { %264 = vmatpush3.xpose.msk.msra.mxu0 %vm32_vm0, %v27_v6  ;;  %313 = vmatpush3.xpose.msk.msra.mxu1 %vm32_vm0, %v27_v6 }
  0x14   :  { %265 = vmatprep.subr.msk.mxu0 %vm32_vm0, %v26_v7  ;;  %298 = vmatprep.subr.msk.mxu1 %vm32_vm0, %v26_v7  ;;  %p336_p4 = pnand %p335_p3, %p329_p0 }
  0x17   :  { %266 = vmatpush3.xpose.msk.msra.mxu0 %vm32_vm0, %v26_v7  ;;  %314 = vmatpush3.xpose.msk.msra.mxu1 %vm32_vm0, %v26_v7 }
  0x18   :  { %267 = vmatprep.subr.msk.mxu0 %vm32_vm0, %v25_v8  ;;  %299 = vmatprep.subr.msk.mxu1 %vm32_vm0, %v25_v8 }
  0x1b   :  { %268 = vmatpush3.xpose.msk.msra.mxu0 %vm32_vm0, %v25_v8  ;;  %315 = vmatpush3.xpose.msk.msra.mxu1 %vm32_vm0, %v25_v8 }
  0x1c   :  { %269 = vmatprep.subr.msk.mxu0 %vm32_vm0, %v24_v9  ;;  %300 = vmatprep.subr.msk.mxu1 %vm32_vm0, %v24_v9 }
  0x1f   :  { %270 = vmatpush3.xpose.msk.msra.mxu0 %vm32_vm0, %v24_v9  ;;  %316 = vmatpush3.xpose.msk.msra.mxu1 %vm32_vm0, %v24_v9 }
  0x20   :  { %271 = vmatprep.subr.msk.mxu0 %vm32_vm0, %v23_v10  ;;  %301 = vmatprep.subr.msk.mxu1 %vm32_vm0, %v23_v10 }
  0x23   :  { %272 = vmatpush3.xpose.msk.msra.mxu0 %vm32_vm0, %v23_v10  ;;  %317 = vmatpush3.xpose.msk.msra.mxu1 %vm32_vm0, %v23_v10 }
  0x24   :  { %273 = vmatprep.subr.msk.mxu0 %vm32_vm0, %v22_v11  ;;  %302 = vmatprep.subr.msk.mxu1 %vm32_vm0, %v22_v11 }
  0x27   :  { %274 = vmatpush3.xpose.msk.msra.mxu0 %vm32_vm0, %v22_v11  ;;  %318 = vmatpush3.xpose.msk.msra.mxu1 %vm32_vm0, %v22_v11 }
  0x28   :  { %275 = vmatprep.subr.msk.mxu0 %vm32_vm0, %v21_v12  ;;  %303 = vmatprep.subr.msk.mxu1 %vm32_vm0, %v21_v12 }
  0x2b   :  { %276 = vmatpush3.xpose.msk.msra.mxu0 %vm32_vm0, %v21_v12  ;;  %319 = vmatpush3.xpose.msk.msra.mxu1 %vm32_vm0, %v21_v12 }
  0x2c   :  { %277 = vmatprep.subr.msk.mxu0 %vm32_vm0, %v20_v13  ;;  %304 = vmatprep.subr.msk.mxu1 %vm32_vm0, %v20_v13 }
  0x2f   :  { %278 = vmatpush3.xpose.msk.msra.mxu0 %vm32_vm0, %v20_v13  ;;  %320 = vmatpush3.xpose.msk.msra.mxu1 %vm32_vm0, %v20_v13 }
  0x30   :  { %279 = vmatprep.subr.msk.mxu0 %vm32_vm0, %v19_v14  ;;  %305 = vmatprep.subr.msk.mxu1 %vm32_vm0, %v19_v14 }
  0x33   :  { %280 = vmatpush3.xpose.msk.msra.mxu0 %vm32_vm0, %v19_v14  ;;  %321 = vmatpush3.xpose.msk.msra.mxu1 %vm32_vm0, %v19_v14 }
  0x34   :  { %281 = vmatprep.subr.msk.mxu0 %vm32_vm0, %v18_v15  ;;  %306 = vmatprep.subr.msk.mxu1 %vm32_vm0, %v18_v15 }
  0x37   :  { %282 = vmatpush3.xpose.msk.msra.mxu0 %vm32_vm0, %v18_v15  ;;  %322 = vmatpush3.xpose.msk.msra.mxu1 %vm32_vm0, %v18_v15 }
  0x38   :  { %283 = vmatprep.subr.msk.mxu0 %vm32_vm0, %v17_v16  ;;  %307 = vmatprep.subr.msk.mxu1 %vm32_vm0, %v17_v16 }
  0x3b   :  { %284 = vmatpush3.xpose.msk.msra.mxu0 %vm32_vm0, %v17_v16  ;;  %323 = vmatpush3.xpose.msk.msra.mxu1 %vm32_vm0, %v17_v16 }
  0x3c   :  { %285 = vmatprep.subr.msk.mxu0 %vm32_vm0, %v16_v17  ;;  %308 = vmatprep.subr.msk.mxu1 %vm32_vm0, %v16_v17 }
  0x3f   :  { %286 = vmatpush3.xpose.msk.msra.mxu0 %vm32_vm0, %v16_v17  ;;  %324 = vmatpush3.xpose.msk.msra.mxu1 %vm32_vm0, %v16_v17 }
  0x42   :  { %288 = vmatmul.mubr.msk.f32.vlgmr.msra.gmra.mxu0 %vm32_vm0, %v13_v18  ;;  %291 = vmatmul.mubr.msk.f32.vlgmr.msra.gmra.mxu1 %vm32_vm0, %v15_v19 }
 0x102   :  { %v289_v22 = vpop.f32.mrf.mxu0  ;;  %v292_v23 = vpop.f32.mrf.mxu1 }
 0x103   :  { %v182_v26 = vsel %vm180_vm1, %v289_v22, -inf  ;;  %v184_v27 = vsel %vm180_vm1, %v292_v23, -inf }
 0x104   :  { %v159_v24 = vpop.f32.mrf.mxu0  ;;  %v169_v25 = vpop.f32.mrf.mxu1 }
 0x105   :  { %v181_v28 = vsel %vm180_vm1, %v159_v24, -inf  ;;  %v183_v29 = vsel %vm180_vm1, %v169_v25, -inf }
 0x106   :  { %v185_v30 = vmax.f32 %v181_v28, %v182_v26  ;;  %v186_v31 = vmax.f32 %v183_v29, %v184_v27 }
 0x108   :  { %v187_v32 = vmax.f32 %v185_v30, %v186_v31 }
 0x10a   :  { %188 = vmax.xlane.f32.xlu0 %v187_v32 }
 0x193   :  { %v189_v33 = vpop.xlane.xlu0 %188 }
 0x194   :  { %v190_v34 = vrot.slane %v189_v33, 4 }
 0x196   :  { %v191_v35 = vmax.f32 %v189_v33, %v190_v34 }
 0x198   :  { %v192_v36 = vrot.slane %v191_v35, 2 }
 0x19a   :  { %v193_v37 = vmax.f32 %v191_v35, %v192_v36 }
 0x19c   :  { %v194_v38 = vrot.slane %v193_v37, 1 }
 0x19e   :  { %v195_v39 = vmax.f32 %v193_v37, %v194_v38 }
 0x1a0   :  { %325 = vpush %v195_v39 }
 0x1d1   :  { %s326_s21 = spop %325 }
 0x1d2   :  { %v197_v40 = vstv %s326_s21 }
 0x1d3   :  { %200 = vst.msk [vmem:[#allocation2] sm:$0x1] %vm199_vm2, %v197_v40 }
 0x1d4   :  { %339 = shalt.err (!%p336_p4)
}
 0x1d5   :  { %210 = dma.vmem_to_hbm [thread:$0]  %s208_s1, 16, %s499_s2, [#allocation3]  }
 0x1d6   :  { %348 = dma.done.wait [#allocation3], 16  }
 0x1d7   :  { %349 = vsyncadd [#allocation3], 4294967280 }
 0x1d8   :  { %214 = vsyncpa [#allocation3], 1 }

</bundles_post_ra>
